<compile_context>
chip_gen: v6e
topology: v6e:2x2x1
jax: 0.10.0
libtpu: 0.0.40
codegen_flags: <defaults>
</compile_context>

<pallas_src>
import functools
import math

import jax
import jax.numpy as jnp
from jax.experimental import pallas as pl
from jax.experimental.pallas import tpu as pltpu


def _round_up(x, m):
    return ((x + m - 1) // m) * m


# ----------------------------- Pallas kernel ---------------------------------

def group_gat_kernel(x_ref, bias_ref, w_ref, out_ref, *, Na, No, H, Ca):
    """One batch tile.

    x_ref:    (BT, Na*D + No*D)    [self, allies | self, opponents] features
    bias_ref: (BT, Na + No)        additive mask bias (0 valid / -1e30 masked)
    w_ref:    (Na*D + No*D, Ca+Co) fused block-diagonal projection + score matrix
    out_ref:  (BT, H)
    """
    # Single fused MXU matmul: projections of every node of both groups plus
    # the per-node and self attention score columns.
    P = jnp.dot(x_ref[...], w_ref[...], preferred_element_type=jnp.float32)
    bias = bias_ref[...]

    def branch(col0, N, b):
        # score columns produced by the fused matmul
        s_node = P[:, col0 + N * H: col0 + N * H + N]              # (BT, N)
        s_self = P[:, col0 + N * H + N: col0 + N * H + N + 1]      # (BT, 1)
        e = s_node + s_self
        e = jnp.where(e >= 0.0, e, 0.2 * e)                        # LeakyReLU(0.2)
        e = e + b                                                  # mask bias
        # masked softmax over the (small) node axis; masked lanes underflow to 0
        e_max = jnp.max(e, axis=-1, keepdims=True)
        p = jnp.exp(e - e_max)
        attn = p / jnp.sum(p, axis=-1, keepdims=True)              # (BT, N)
        # weighted sum over the static node axis, vectorized over BT x H lanes
        ws = attn[:, 0:1] * P[:, col0:col0 + H]
        for n in range(1, N):
            ws = ws + attn[:, n:n + 1] * P[:, col0 + n * H: col0 + (n + 1) * H]
        return ws                                                  # (BT, H)

    ws_ally = branch(0, Na, bias[:, :Na])
    ws_opp = branch(Ca, No, bias[:, Na:])

    h_e = P[:, 0:H] + ws_ally + ws_opp          # add_self=True (H_ally[:, 0, :])
    out_ref[...] = jnp.where(h_e > 0.0, h_e, jnp.exp(h_e) - 1.0)   # ELU(alpha=1)


# ------------------------------ host wrapper ----------------------------------

def _branch_weight(W, a, N, H, D):
    """[blockdiag_N(W) | blockdiag_N(W @ a_node) | (W @ a_self ; 0)]."""
    a_self = a[:H, 0]                                       # (H,)
    a_node = a[H:, 0]                                       # (H,)
    Wa_self = W @ a_self                                    # (D,)
    Wa_node = W @ a_node                                    # (D,)
    eye = jnp.eye(N, dtype=W.dtype)
    W_bd = jnp.kron(eye, W)                                 # (N*D, N*H)
    Wn_bd = jnp.kron(eye, Wa_node[:, None])                 # (N*D, N)
    Ws_col = jnp.concatenate(
        [Wa_self, jnp.zeros(((N - 1) * D,), W.dtype)])[:, None]   # (N*D, 1)
    return jnp.concatenate([W_bd, Wn_bd, Ws_col], axis=1)   # (N*D, N*H+N+1)


def group_gat_forward(h, mask, params, num_ally, num_opp, *, block_batch=None):
    """h: (B, num_node, D) f32; mask: (B, num_node) f32 (1.0 => masked out)."""
    B, num_node, D = h.shape
    assert 1 + num_ally + num_opp == num_node
    W_ally, W_opp, a_ally, a_opp = params       # (D,H), (D,H), (2H,1), (2H,1)
    H = W_ally.shape[1]
    Na, No = 1 + num_ally, 1 + num_opp
    Ca, Co = Na * H + Na + 1, No * H + No + 1

    # ---- glue: group split, flatten node axis into lanes (plain JAX) ----
    h_self = h[:, 0:1, :]
    h_ally = jnp.concatenate([h_self, h[:, 1:1 + num_ally, :]], axis=1)   # (B,Na,D)
    h_opp = jnp.concatenate([h_self, h[:, 1 + num_ally:, :]], axis=1)     # (B,No,D)
    x = jnp.concatenate(
        [h_ally.reshape(B, Na * D), h_opp.reshape(B, No * D)], axis=1)    # (B,(Na+No)*D)

    mask_self = jnp.zeros_like(mask[:, 0:1])
    m_ally = jnp.concatenate([mask_self, mask[:, 1:1 + num_ally]], axis=1)
    m_opp = jnp.concatenate([mask_self, mask[:, 1 + num_ally:]], axis=1)
    m_all = jnp.concatenate([m_ally, m_opp], axis=1)                      # (B, Na+No)
    bias = jnp.where(m_all > 0.5, -1e30, 0.0).astype(jnp.float32)

    # ---- fused resident weight (built once) ----
    Wc_a = _branch_weight(W_ally, a_ally, Na, H, D)          # (Na*D, Ca)
    Wc_o = _branch_weight(W_opp, a_opp, No, H, D)            # (No*D, Co)
    Wcomb = jnp.zeros((Na * D + No * D, Ca + Co), jnp.float32)
    Wcomb = Wcomb.at[:Na * D, :Ca].set(Wc_a)
    Wcomb = Wcomb.at[Na * D:, Ca:].set(Wc_o)

    # ---- batch tiling ----
    if block_batch is None:
        BT = min(256, _round_up(B, 8))
    else:
        BT = _round_up(min(block_batch, B), 8)
    B_pad = _round_up(B, BT)
    if B_pad != B:
        x = jnp.pad(x, ((0, B_pad - B), (0, 0)))
        bias = jnp.pad(bias, ((0, B_pad - B), (0, 0)))

    kernel = functools.partial(group_gat_kernel, Na=Na, No=No, H=H, Ca=Ca)
    out = pl.pallas_call(
        kernel,
        out_shape=jax.ShapeDtypeStruct((B_pad, H), jnp.float32),
        grid_spec=pltpu.PrefetchScalarGridSpec(
            num_scalar_prefetch=0,
            grid=(B_pad // BT,),
            in_specs=[
                pl.BlockSpec((BT, Na * D + No * D), lambda t: (t, 0)),
                pl.BlockSpec((BT, Na + No), lambda t: (t, 0)),
                pl.BlockSpec((Na * D + No * D, Ca + Co), lambda t: (0, 0)),
            ],
            out_specs=pl.BlockSpec((BT, H), lambda t: (t, 0)),
        ),
        compiler_params=pltpu.CompilerParams(
            dimension_semantics=("parallel",)),
    )(x, bias, Wcomb)

    return out[:B]


# ------------------------ pure-JAX reference (torch semantics) -----------------

def group_gat_reference(h, mask, params, num_ally, num_opp):
    W_ally, W_opp, a_ally, a_opp = params
    H = W_ally.shape[1]

    def branch(hg, mg, W, a):
        Hm = hg @ W                                          # (B,N,H)
        B, N, C = Hm.shape
        inp = jnp.concatenate(
            [jnp.broadcast_to(Hm[:, 0:1, :], (B, N, C)), Hm], axis=2)   # (B,N,2C)
        e = (inp @ a)[..., 0]                                # (B,N)
        e = jnp.where(e >= 0, e, 0.2 * e)                    # LeakyReLU
        e = jnp.where(mg > 0.5, -jnp.inf, e)
        attn = jax.nn.softmax(e, axis=-1)
        attn = jnp.where(mg > 0.5, 0.0, attn)
        return Hm, jnp.einsum('bn,bnh->bh', attn, Hm)

    h_self = h[:, 0:1, :]
    h_ally = jnp.concatenate([h_self, h[:, 1:1 + num_ally, :]], axis=1)
    h_opp = jnp.concatenate([h_self, h[:, 1 + num_ally:, :]], axis=1)
    mask_self = jnp.zeros_like(mask[:, 0:1])
    m_ally = jnp.concatenate([mask_self, mask[:, 1:1 + num_ally]], axis=1)
    m_opp = jnp.concatenate([mask_self, mask[:, 1 + num_ally:]], axis=1)

    H_ally, ws_ally = branch(h_ally, m_ally, W_ally, a_ally)
    _, ws_opp = branch(h_opp, m_opp, W_opp, a_opp)
    h_e = H_ally[:, 0, :] + ws_ally + ws_opp
    h_e = jnp.where(h_e > 0, h_e, jnp.exp(h_e) - 1.0)        # ELU
    return h_e.reshape(-1, H)


# ---------------------------------- main ---------------------------------------

if __name__ == "__main__":
    input_dim = 16
    hidden_dim = 32
    num_ally = 3
    num_opp = 4
    num_node = 1 + num_ally + num_opp

    key = jax.random.PRNGKey(0)
    k_w1, k_w2, k_a1, k_a2 = jax.random.split(key, 4)

    # Deterministic xavier_uniform(gain=1.414) equivalents.
    def xavier(k, shape, gain=1.414):
        fan_out, fan_in = shape[0], shape[1]
        bound = gain * math.sqrt(6.0 / (fan_in + fan_out))
        return jax.random.uniform(k, shape, jnp.float32, -bound, bound)

    W_ally = xavier(k_w1, (input_dim, hidden_dim))
    W_opp = xavier(k_w2, (input_dim, hidden_dim))
    a_ally = xavier(k_a1, (2 * hidden_dim, 1))
    a_opp = xavier(k_a2, (2 * hidden_dim, 1))
    params = (W_ally, W_opp, a_ally, a_opp)

    # Two small configs: default tile (exercises batch padding) and an
    # explicit small tile (exercises a multi-step grid).
    for B, bb in ((6, None), (20, 8)):
        dkey = jax.random.fold_in(key, B)
        k_h, k_m = jax.random.split(dkey)
        h = jax.random.normal(k_h, (B, num_node, input_dim), dtype=jnp.float32)
        # mask: 1.0 => node is masked out (dead); self node is never masked.
        mask = jax.random.bernoulli(k_m, 0.3, (B, num_node)).astype(jnp.float32)

        out = group_gat_forward(h, mask, params, num_ally, num_opp,
                                block_batch=bb)
        out = jax.block_until_ready(out)

        ref = group_gat_reference(h, mask, params, num_ally, num_opp)
        assert out.shape == (B, hidden_dim)
        # tolerance 1e-4: kernel scores use h.(W a) factorization vs (h W).a
        # in the reference, so bit-exactness is not expected.
        assert jnp.allclose(out, ref, atol=1e-4, rtol=1e-4), \
            f"kernel mismatch vs reference (B={B})"

    print("KERNEL_OK")
</pallas_src>

<mosaic_0001>
module attributes {stable_mosaic.version = 11 : i64} {
  func.func @group_gat_kernel(%arg0: i32, %arg1: memref<8x144xf32, #tpu.memory_space<vmem>>, %arg2: memref<8x9xf32, #tpu.memory_space<vmem>>, %arg3: memref<144x299xf32, #tpu.memory_space<vmem>>, %arg4: memref<8x32xf32, #tpu.memory_space<vmem>>) attributes {dimension_semantics = [#tpu.dimension_semantics<parallel>], iteration_bounds = array<i64: 1>, scalar_prefetch = 0 : i64, scratch_operands = 0 : i64, tpu.core_type = #tpu.core_type<tc>, window_params = [{transform_indices = @transform_0, window_bounds = array<i64: 8, 144>}, {transform_indices = @transform_1, window_bounds = array<i64: 8, 9>}, {pipeline_mode = #tpu.pipeline_mode<synchronous>, transform_indices = @transform_2, window_bounds = array<i64: 144, 299>}, {transform_indices = @transform_3, window_bounds = array<i64: 8, 32>}]} {
    %c0 = arith.constant 0 : index
    %c0_0 = arith.constant 0 : index
    %0 = vector.load %arg1[%c0, %c0_0] : memref<8x144xf32, #tpu.memory_space<vmem>>, vector<8x144xf32>
    %c0_1 = arith.constant 0 : index
    %c0_2 = arith.constant 0 : index
    %1 = vector.load %arg3[%c0_1, %c0_2] : memref<144x299xf32, #tpu.memory_space<vmem>>, vector<144x299xf32>
    %cst = arith.constant dense<0.000000e+00> : vector<8x299xf32>
    %2 = tpu.matmul %0, %1, %cst {dimension_numbers = #tpu.dot_dimension_numbers<[1], [0], [0], [1], [0, 0, 1, 1], [], []>} : vector<8x144xf32>, vector<144x299xf32>, vector<8x299xf32> -> vector<8x299xf32>
    %c0_3 = arith.constant 0 : index
    %c0_4 = arith.constant 0 : index
    %3 = vector.load %arg2[%c0_3, %c0_4] : memref<8x9xf32, #tpu.memory_space<vmem>>, vector<8x9xf32>
    %4 = vector.extract_strided_slice %3 {offsets = [0, 0], sizes = [8, 4], strides = [1, 1]} : vector<8x9xf32> to vector<8x4xf32>
    %5 = vector.extract_strided_slice %2 {offsets = [0, 128], sizes = [8, 4], strides = [1, 1]} : vector<8x299xf32> to vector<8x4xf32>
    %6 = vector.extract_strided_slice %2 {offsets = [0, 132], sizes = [8, 1], strides = [1, 1]} : vector<8x299xf32> to vector<8x1xf32>
    %7 = vector.broadcast %6 : vector<8x1xf32> to vector<8x4xf32>
    %8 = arith.addf %5, %7 : vector<8x4xf32>
    %cst_5 = arith.constant 0.000000e+00 : f32
    %9 = vector.broadcast %cst_5 : f32 to vector<8x4xf32>
    %10 = arith.cmpf oge, %8, %9 : vector<8x4xf32>
    %cst_6 = arith.constant 2.000000e-01 : f32
    %11 = vector.broadcast %cst_6 : f32 to vector<8x4xf32>
    %12 = arith.mulf %11, %8 : vector<8x4xf32>
    %13 = arith.select %10, %8, %12 : vector<8x4xi1>, vector<8x4xf32>
    %14 = arith.addf %13, %4 : vector<8x4xf32>
    %cst_7 = arith.constant dense<0xFF800000> : vector<8xf32>
    %15 = vector.multi_reduction <maximumf>, %14, %cst_7 [1] : vector<8x4xf32> to vector<8xf32>
    %16 = vector.shape_cast %15 : vector<8xf32> to vector<8x1xf32>
    %17 = vector.broadcast %16 : vector<8x1xf32> to vector<8x4xf32>
    %18 = arith.subf %14, %17 : vector<8x4xf32>
    %19 = math.exp %18 : vector<8x4xf32>
    %cst_8 = arith.constant dense<0.000000e+00> : vector<8xf32>
    %20 = vector.multi_reduction <add>, %19, %cst_8 [1] : vector<8x4xf32> to vector<8xf32>
    %21 = vector.shape_cast %20 : vector<8xf32> to vector<8x1xf32>
    %22 = vector.broadcast %21 : vector<8x1xf32> to vector<8x4xf32>
    %23 = arith.divf %19, %22 : vector<8x4xf32>
    %24 = vector.extract_strided_slice %23 {offsets = [0, 0], sizes = [8, 1], strides = [1, 1]} : vector<8x4xf32> to vector<8x1xf32>
    %25 = vector.extract_strided_slice %2 {offsets = [0, 0], sizes = [8, 32], strides = [1, 1]} : vector<8x299xf32> to vector<8x32xf32>
    %26 = vector.broadcast %24 : vector<8x1xf32> to vector<8x32xf32>
    %27 = arith.mulf %26, %25 : vector<8x32xf32>
    %28 = vector.extract_strided_slice %23 {offsets = [0, 1], sizes = [8, 1], strides = [1, 1]} : vector<8x4xf32> to vector<8x1xf32>
    %29 = vector.extract_strided_slice %2 {offsets = [0, 32], sizes = [8, 32], strides = [1, 1]} : vector<8x299xf32> to vector<8x32xf32>
    %30 = vector.broadcast %28 : vector<8x1xf32> to vector<8x32xf32>
    %31 = arith.mulf %30, %29 : vector<8x32xf32>
    %32 = arith.addf %27, %31 : vector<8x32xf32>
    %33 = vector.extract_strided_slice %23 {offsets = [0, 2], sizes = [8, 1], strides = [1, 1]} : vector<8x4xf32> to vector<8x1xf32>
    %34 = vector.extract_strided_slice %2 {offsets = [0, 64], sizes = [8, 32], strides = [1, 1]} : vector<8x299xf32> to vector<8x32xf32>
    %35 = vector.broadcast %33 : vector<8x1xf32> to vector<8x32xf32>
    %36 = arith.mulf %35, %34 : vector<8x32xf32>
    %37 = arith.addf %32, %36 : vector<8x32xf32>
    %38 = vector.extract_strided_slice %23 {offsets = [0, 3], sizes = [8, 1], strides = [1, 1]} : vector<8x4xf32> to vector<8x1xf32>
    %39 = vector.extract_strided_slice %2 {offsets = [0, 96], sizes = [8, 32], strides = [1, 1]} : vector<8x299xf32> to vector<8x32xf32>
    %40 = vector.broadcast %38 : vector<8x1xf32> to vector<8x32xf32>
    %41 = arith.mulf %40, %39 : vector<8x32xf32>
    %42 = arith.addf %37, %41 : vector<8x32xf32>
    %43 = vector.extract_strided_slice %3 {offsets = [0, 4], sizes = [8, 5], strides = [1, 1]} : vector<8x9xf32> to vector<8x5xf32>
    %44 = vector.extract_strided_slice %2 {offsets = [0, 293], sizes = [8, 5], strides = [1, 1]} : vector<8x299xf32> to vector<8x5xf32>
    %45 = vector.extract_strided_slice %2 {offsets = [0, 298], sizes = [8, 1], strides = [1, 1]} : vector<8x299xf32> to vector<8x1xf32>
    %46 = vector.broadcast %45 : vector<8x1xf32> to vector<8x5xf32>
    %47 = arith.addf %44, %46 : vector<8x5xf32>
    %cst_9 = arith.constant 0.000000e+00 : f32
    %48 = vector.broadcast %cst_9 : f32 to vector<8x5xf32>
    %49 = arith.cmpf oge, %47, %48 : vector<8x5xf32>
    %cst_10 = arith.constant 2.000000e-01 : f32
    %50 = vector.broadcast %cst_10 : f32 to vector<8x5xf32>
    %51 = arith.mulf %50, %47 : vector<8x5xf32>
    %52 = arith.select %49, %47, %51 : vector<8x5xi1>, vector<8x5xf32>
    %53 = arith.addf %52, %43 : vector<8x5xf32>
    %cst_11 = arith.constant dense<0xFF800000> : vector<8xf32>
    %54 = vector.multi_reduction <maximumf>, %53, %cst_11 [1] : vector<8x5xf32> to vector<8xf32>
    %55 = vector.shape_cast %54 : vector<8xf32> to vector<8x1xf32>
    %56 = vector.broadcast %55 : vector<8x1xf32> to vector<8x5xf32>
    %57 = arith.subf %53, %56 : vector<8x5xf32>
    %58 = math.exp %57 : vector<8x5xf32>
    %cst_12 = arith.constant dense<0.000000e+00> : vector<8xf32>
    %59 = vector.multi_reduction <add>, %58, %cst_12 [1] : vector<8x5xf32> to vector<8xf32>
    %60 = vector.shape_cast %59 : vector<8xf32> to vector<8x1xf32>
    %61 = vector.broadcast %60 : vector<8x1xf32> to vector<8x5xf32>
    %62 = arith.divf %58, %61 : vector<8x5xf32>
    %63 = vector.extract_strided_slice %62 {offsets = [0, 0], sizes = [8, 1], strides = [1, 1]} : vector<8x5xf32> to vector<8x1xf32>
    %64 = vector.extract_strided_slice %2 {offsets = [0, 133], sizes = [8, 32], strides = [1, 1]} : vector<8x299xf32> to vector<8x32xf32>
    %65 = vector.broadcast %63 : vector<8x1xf32> to vector<8x32xf32>
    %66 = arith.mulf %65, %64 : vector<8x32xf32>
    %67 = vector.extract_strided_slice %62 {offsets = [0, 1], sizes = [8, 1], strides = [1, 1]} : vector<8x5xf32> to vector<8x1xf32>
    %68 = vector.extract_strided_slice %2 {offsets = [0, 165], sizes = [8, 32], strides = [1, 1]} : vector<8x299xf32> to vector<8x32xf32>
    %69 = vector.broadcast %67 : vector<8x1xf32> to vector<8x32xf32>
    %70 = arith.mulf %69, %68 : vector<8x32xf32>
    %71 = arith.addf %66, %70 : vector<8x32xf32>
    %72 = vector.extract_strided_slice %62 {offsets = [0, 2], sizes = [8, 1], strides = [1, 1]} : vector<8x5xf32> to vector<8x1xf32>
    %73 = vector.extract_strided_slice %2 {offsets = [0, 197], sizes = [8, 32], strides = [1, 1]} : vector<8x299xf32> to vector<8x32xf32>
    %74 = vector.broadcast %72 : vector<8x1xf32> to vector<8x32xf32>
    %75 = arith.mulf %74, %73 : vector<8x32xf32>
    %76 = arith.addf %71, %75 : vector<8x32xf32>
    %77 = vector.extract_strided_slice %62 {offsets = [0, 3], sizes = [8, 1], strides = [1, 1]} : vector<8x5xf32> to vector<8x1xf32>
    %78 = vector.extract_strided_slice %2 {offsets = [0, 229], sizes = [8, 32], strides = [1, 1]} : vector<8x299xf32> to vector<8x32xf32>
    %79 = vector.broadcast %77 : vector<8x1xf32> to vector<8x32xf32>
    %80 = arith.mulf %79, %78 : vector<8x32xf32>
    %81 = arith.addf %76, %80 : vector<8x32xf32>
    %82 = vector.extract_strided_slice %62 {offsets = [0, 4], sizes = [8, 1], strides = [1, 1]} : vector<8x5xf32> to vector<8x1xf32>
    %83 = vector.extract_strided_slice %2 {offsets = [0, 261], sizes = [8, 32], strides = [1, 1]} : vector<8x299xf32> to vector<8x32xf32>
    %84 = vector.broadcast %82 : vector<8x1xf32> to vector<8x32xf32>
    %85 = arith.mulf %84, %83 : vector<8x32xf32>
    %86 = arith.addf %81, %85 : vector<8x32xf32>
    %87 = vector.extract_strided_slice %2 {offsets = [0, 0], sizes = [8, 32], strides = [1, 1]} : vector<8x299xf32> to vector<8x32xf32>
    %88 = arith.addf %87, %42 : vector<8x32xf32>
    %89 = arith.addf %88, %86 : vector<8x32xf32>
    %cst_13 = arith.constant 0.000000e+00 : f32
    %90 = vector.broadcast %cst_13 : f32 to vector<8x32xf32>
    %91 = arith.cmpf ogt, %89, %90 : vector<8x32xf32>
    %92 = math.exp %89 : vector<8x32xf32>
    %cst_14 = arith.constant 1.000000e+00 : f32
    %93 = vector.broadcast %cst_14 : f32 to vector<8x32xf32>
    %94 = arith.subf %92, %93 : vector<8x32xf32>
    %95 = arith.select %91, %89, %94 : vector<8x32xi1>, vector<8x32xf32>
    %c0_15 = arith.constant 0 : index
    %c0_16 = arith.constant 0 : index
    %96 = vector.load %arg4[%c0_15, %c0_16] : memref<8x32xf32, #tpu.memory_space<vmem>>, vector<8x32xf32>
    tpu.vector_store %arg4[%c0_15, %c0_16], %95 {strides = array<i32>} : memref<8x32xf32, #tpu.memory_space<vmem>>, vector<8x32xf32>,
    return
  }
  func.func @transform_0(%arg0: i32) -> (i32, i32) {
    %c0_i32 = arith.constant 0 : i32
    %c0_i32_0 = arith.constant 0 : i32
    return %arg0, %c0_i32 : i32, i32
  }
  func.func @transform_1(%arg0: i32) -> (i32, i32) {
    %c0_i32 = arith.constant 0 : i32
    %c0_i32_0 = arith.constant 0 : i32
    return %arg0, %c0_i32 : i32, i32
  }
  func.func @transform_2(%arg0: i32) -> (i32, i32) {
    %c0_i32 = arith.constant 0 : i32
    %c0_i32_0 = arith.constant 0 : i32
    %c0_i32_1 = arith.constant 0 : i32
    return %c0_i32, %c0_i32_0 : i32, i32
  }
  func.func @transform_3(%arg0: i32) -> (i32, i32) {
    %c0_i32 = arith.constant 0 : i32
    %c0_i32_0 = arith.constant 0 : i32
    return %arg0, %c0_i32 : i32, i32
  }
}

</mosaic_0001>

<bundles_post_ra>
// kernel: tpu_custom_call.1
= control target key start
LH: loop header
LB: loop body
LE: loop exit
PB: predicated region body
PF: predicated region fallthrough
CT: control target
= control target key end

     0   :  { %8 = vsyncpa [#allocation3], 0  ;;  %s659_s0 = inlined_call_operand.hbm [shape: f32[8,144], index: 0, kind: input, shape index: {}]   ;;  %s660_s1 = inlined_call_operand.hbm [shape: f32[8,9], index: 1, kind: input, shape index: {}]   ;;  %s661_s2 = inlined_call_operand.hbm [shape: f32[144,299], index: 2, kind: input, shape index: {}]   ;;  %s662_s3 = inlined_call_operand.hbm [shape: f32[8,32], index: 3, kind: output, shape index: {}]  }
   0x1   :  { %9 = vsyncpa [#allocation6], 0 }
   0x2   :  { %10 = vsyncpa [#allocation4], 0  ;;  %s554_s12 = smov [#allocation5]   ;;  %s555_s14 = smov [#allocation2]  }
   0x3   :  { %s27_s13 = sshll.u32 %s554_s12, 4  ;;  %s17_s15 = sshll.u32 %s555_s14, 4  ;;  %s28_s13 = int_to_ptr.vmem [resolvable:$true] %s27_s13  ;;  %s18_s15 = int_to_ptr.vmem [resolvable:$true] %s17_s15 }
   0x4   :  { %s476_s16 = scalar_lea.vmem %s28_s13, 128  ;;  %p481_p1 = scmp.lt.s32.totalorder %s28_s13, %s28_s13 }
   0x5   :  { %p477_p0 = scmp.ne.s32.totalorder %s28_s13, %s476_s16  ;;  %p482_p2 = scmp.lt.s32.totalorder %s476_s16, %s476_s16 }
   0x7   :  { %p483_p3 = por %p482_p2, %p481_p1 }
   0x9   :  { %p484_p4 = pnand %p483_p3, %p477_p0 }
   0xb   :  { %487 = shalt.err (!%p484_p4)
}
   0xc   :  { %30 = dma.hbm_to_vmem [thread:$0]  %s660_s1, 128, %s28_s13, [#allocation6]  }
   0xd   :  { %s496_s19 = scalar_lea.vmem %s18_s15, 256  ;;  %p501_p6 = scmp.lt.s32.totalorder %s18_s15, %s18_s15 }
   0xe   :  { %p497_p5 = scmp.ne.s32.totalorder %s18_s15, %s496_s19  ;;  %p502_p7 = scmp.lt.s32.totalorder %s496_s19, %s496_s19 }
  0x10   :  { %p503_p8 = por %p502_p7, %p501_p6 }
  0x12   :  { %p504_p9 = pnand %p503_p8, %p497_p5 }
  0x14   :  { %507 = shalt.err (!%p504_p9)
}
  0x15   :  { %20 = dma.hbm_to_vmem [thread:$0]  %s659_s0, 256, %s18_s15, [#allocation3]  }
  0x16   :  { %s556_s22 = smov [#allocation7]  }
  0x17   :  { %s36_s23 = sshll.u32 %s556_s22, 4  ;;  %s37_s23 = int_to_ptr.vmem [resolvable:$true] %s36_s23 }
  0x18   :  { %s516_s24 = scalar_lea.vmem %s37_s23, 6912  ;;  %p521_p11 = scmp.lt.s32.totalorder %s37_s23, %s37_s23 }
  0x19   :  { %p517_p10 = scmp.ne.s32.totalorder %s37_s23, %s516_s24  ;;  %p522_p12 = scmp.lt.s32.totalorder %s516_s24, %s516_s24 }
  0x1b   :  { %p523_p13 = por %p522_p12, %p521_p11 }
  0x1d   :  { %p524_p0 = pnand %p523_p13, %p517_p10 }
  0x1f   :  { %527 = shalt.err (!%p524_p0)
}
  0x20   :  { %s557_s1 = smov 384   ;;  %s558_s25 = smov 24  }
  0x21   :  { %42 = dma.hbm_to_vmem [thread:$0]  %s661_s2, 6912, %s37_s23, [#allocation6], %s557_s1, %s557_s1, %s558_s25  }
  0x22   :  { %548 = dma.done.wait [#allocation3], 256  }
  0x23   :  { %549 = vsyncadd [#allocation3], 4294967040 }
  0x24   :  { %550 = dma.done.wait [#allocation6], 7040  }
  0x25   :  { %551 = vsyncadd [#allocation6], 4294960256  ;;  %v559_v0 = vmov 0.0   ;;  %v560_v1 = vmov 42   ;;  %v101_v2 = vld [vmem:[#allocation7 + $0x178] sm:$0xff]  ;;  %v98_v3 = vld [vmem:[#allocation7 + $0x160] sm:$0xff] }
  0x26   :  { %183 = vmatprep.subr.mxu1 %v559_v0  ;;  %446 = vset.pattern.permute.xlu0 %v560_v1  ;;  %v95_v4 = vld [vmem:[#allocation7 + $0x148] sm:$0xff]  ;;  %v92_v5 = vld [vmem:[#allocation7 + $0x130] sm:$0xff]  ;;  %vm108_vm0 = vcmask 130048   ;;  %v89_v6 = vld [vmem:[#allocation7 + $0x118] sm:$0xff]  ;;  %s561_s0 = smov 33   ;;  %v562_v61 = vmov 4  }
  0x27   :  { %184 = vmatpush1.msra.mxu1 %v101_v2  ;;  %v611_v7 = vld [vmem:[#allocation2 + $0x8] sm:$0xff]  ;;  %v99_v9 = vld [vmem:[#allocation7 + $0x168] sm:$0xff]  ;;  %v97_v10 = vld [vmem:[#allocation7 + $0x158] sm:$0xff]  ;;  %447 = vset.pattern.permute.xlu1 %v562_v61  ;;  %vm326_vm2 = vcmask 343336   ;;  %s563_s2 = smov 91   ;;  %vm264_vm4 = vcmask 31744  }
  0x28   :  { %185 = vmatprep.subr.mxu1 %v559_v0  ;;  %v100_v8 = vld [vmem:[#allocation7 + $0x170] sm:$0xff]  ;;  %420 = vmatprep.mubr.msk.f32.mxu1 %vm108_vm0, %v611_v7  ;;  %v86_v11 = vld [vmem:[#allocation7 + $0x100] sm:$0xff]  ;;  %v83_v14 = vld [vmem:[#allocation7 + $0xe8] sm:$0xff]  ;;  %vm337_vm5 = vcmask 39936   ;;  %s573_s28 = smov 96   ;;  %s574_s29 = smov 64  }
  0x29   :  { %186 = vmatpush1.msra.mxu1 %v98_v3  ;;  %112 = vmatprep.subr.mxu0 %v100_v8  ;;  %v96_v12 = vld [vmem:[#allocation7 + $0x150] sm:$0xff]  ;;  %v94_v13 = vld [vmem:[#allocation7 + $0x140] sm:$0xff]  ;;  %v93_v15 = vld [vmem:[#allocation7 + $0x138] sm:$0xff]  ;;  %s575_s30 = smov 32   ;;  %vm381_vm6 = vcmask 261120   ;;  %s576_s4 = smov 123  }
  0x2a   :  { %187 = vmatprep.subr.mxu1 %v559_v0  ;;  %113 = vmatpush1.msra.mxu0 %v99_v9  ;;  %v91_v16 = vld [vmem:[#allocation7 + $0x128] sm:$0xff]  ;;  %v80_v17 = vld [vmem:[#allocation7 + $0xd0] sm:$0xff]  ;;  %v90_v18 = vld [vmem:[#allocation7 + $0x120] sm:$0xff]  ;;  %s577_s5 = smov [#allocation8]  }
  0x2b   :  { %188 = vmatpush1.msra.mxu1 %v95_v4  ;;  %114 = vmatprep.subr.mxu0 %v97_v10  ;;  %v88_v19 = vld [vmem:[#allocation7 + $0x110] sm:$0xff]  ;;  %v77_v20 = vld [vmem:[#allocation7 + $0xb8] sm:$0xff]  ;;  %v87_v21 = vld [vmem:[#allocation7 + $0x108] sm:$0xff]  ;;  %s409_s6 = sshll.u32 %s577_s5, 4  ;;  %s410_s6 = int_to_ptr.vmem [resolvable:$true] %s409_s6 }
  0x2c   :  { %189 = vmatprep.subr.mxu1 %v559_v0  ;;  %115 = vmatpush1.msra.mxu0 %v96_v12  ;;  %v85_v22 = vld [vmem:[#allocation7 + $0xf8] sm:$0xff]  ;;  %v74_v23 = vld [vmem:[#allocation7 + $0xa0] sm:$0xff]  ;;  %v84_v24 = vld [vmem:[#allocation7 + $0xf0] sm:$0xff]  ;;  %s528_s7 = scalar_lea.vmem %s410_s6, 128  ;;  %p533_p2 = scmp.lt.s32.totalorder %s410_s6, %s410_s6 }
  0x2d   :  { %190 = vmatpush1.msra.mxu1 %v92_v5  ;;  %116 = vmatprep.subr.mxu0 %v94_v13  ;;  %v82_v25 = vld [vmem:[#allocation7 + $0xe0] sm:$0xff]  ;;  %v71_v26 = vld [vmem:[#allocation7 + $0x88] sm:$0xff]  ;;  %v81_v27 = vld [vmem:[#allocation7 + $0xd8] sm:$0xff]  ;;  %p529_p1 = scmp.ne.s32.totalorder %s410_s6, %s528_s7  ;;  %p534_p3 = scmp.lt.s32.totalorder %s528_s7, %s528_s7 }
  0x2e   :  { %191 = vmatprep.subr.mxu1 %v559_v0  ;;  %117 = vmatpush1.msra.mxu0 %v93_v15  ;;  %v79_v28 = vld [vmem:[#allocation7 + $0xc8] sm:$0xff]  ;;  %v68_v29 = vld [vmem:[#allocation7 + $0x70] sm:$0xff]  ;;  %v78_v30 = vld [vmem:[#allocation7 + $0xc0] sm:$0xff] }
  0x2f   :  { %192 = vmatpush1.msra.mxu1 %v89_v6  ;;  %118 = vmatprep.subr.mxu0 %v91_v16  ;;  %v76_v31 = vld [vmem:[#allocation7 + $0xb0] sm:$0xff]  ;;  %v65_v32 = vld [vmem:[#allocation7 + $0x58] sm:$0xff]  ;;  %v75_v33 = vld [vmem:[#allocation7 + $0xa8] sm:$0xff]  ;;  %p535_p4 = por %p534_p3, %p533_p2 }
  0x30   :  { %193 = vmatprep.subr.mxu1 %v559_v0  ;;  %119 = vmatpush1.msra.mxu0 %v90_v18  ;;  %v73_v34 = vld [vmem:[#allocation7 + $0x98] sm:$0xff]  ;;  %v62_v35 = vld [vmem:[#allocation7 + $0x40] sm:$0xff]  ;;  %v72_v36 = vld [vmem:[#allocation7 + $0x90] sm:$0xff] }
  0x31   :  { %194 = vmatpush1.msra.mxu1 %v86_v11  ;;  %120 = vmatprep.subr.mxu0 %v88_v19  ;;  %v70_v37 = vld [vmem:[#allocation7 + $0x80] sm:$0xff]  ;;  %v59_v38 = vld [vmem:[#allocation7 + $0x28] sm:$0xff]  ;;  %v69_v39 = vld [vmem:[#allocation7 + $0x78] sm:$0xff]  ;;  %v564_v19 = vmov 38   ;;  %p536_p5 = pnand %p535_p4, %p529_p1 }
  0x32   :  { %195 = vmatprep.subr.mxu1 %v559_v0  ;;  %121 = vmatpush1.msra.mxu0 %v87_v21  ;;  %v67_v40 = vld [vmem:[#allocation7 + $0x68] sm:$0xff]  ;;  %v56_v41 = vld [vmem:[#allocation7 + $0x10] sm:$0xff]  ;;  %v66_v42 = vld [vmem:[#allocation7 + $0x60] sm:$0xff] }
  0x33   :  { %196 = vmatpush1.msra.mxu1 %v83_v14  ;;  %122 = vmatprep.subr.mxu0 %v85_v22  ;;  %v64_v43 = vld [vmem:[#allocation7 + $0x50] sm:$0xff]  ;;  %v107_v44 = vld [vmem:[#allocation7 + $0x1a8] sm:$0xff]  ;;  %v61_v46 = vld [vmem:[#allocation7 + $0x38] sm:$0xff] }
  0x34   :  { %197 = vmatprep.subr.mxu1 %v559_v0  ;;  %123 = vmatpush1.msra.mxu0 %v84_v24  ;;  %v63_v45 = vld [vmem:[#allocation7 + $0x48] sm:$0xff]  ;;  %v104_v47 = vld [vmem:[#allocation7 + $0x190] sm:$0xff]  ;;  %v58_v50 = vld [vmem:[#allocation7 + $0x20] sm:$0xff] }
  0x35   :  { %198 = vmatpush1.msra.mxu1 %v80_v17  ;;  %124 = vmatprep.subr.mxu0 %v82_v25  ;;  %v60_v48 = vld [vmem:[#allocation7 + $0x30] sm:$0xff]  ;;  %v52_v49 = vld [vmem:[#allocation2] sm:$0xff]  ;;  %v57_v51 = vld [vmem:[#allocation7 + $0x18] sm:$0xff] }
  0x36   :  { %199 = vmatprep.subr.mxu1 %v559_v0  ;;  %125 = vmatpush1.msra.mxu0 %v81_v27  ;;  %v55_v52 = vld [vmem:[#allocation7 + $0x8] sm:$0xff]  ;;  %v54_v53 = vld [vmem:[#allocation7] sm:$0xff]  ;;  %v105_v55 = vld [vmem:[#allocation7 + $0x198] sm:$0xff] }
  0x37   :  { %200 = vmatpush1.msra.mxu1 %v77_v20  ;;  %126 = vmatprep.subr.mxu0 %v79_v28  ;;  %v106_v54 = vld [vmem:[#allocation7 + $0x1a0] sm:$0xff]  ;;  %v103_v56 = vld [vmem:[#allocation7 + $0x188] sm:$0xff]  ;;  %v253_v60 = vld [vmem:[#allocation5] sm:$0xff]  ;;  %v565_v20 = vmov 39  }
  0x38   :  { %201 = vmatprep.subr.mxu1 %v559_v0  ;;  %127 = vmatpush1.msra.mxu0 %v78_v30  ;;  %v102_v57 = vld [vmem:[#allocation7 + $0x180] sm:$0xff]  ;;  %v567_v30 = vmov 41  }
  0x39   :  { %202 = vmatpush1.msra.mxu1 %v74_v23  ;;  %128 = vmatprep.subr.mxu0 %v76_v31  ;;  %v568_v31 = vmov 1  }
  0x3a   :  { %203 = vmatprep.subr.mxu1 %v559_v0  ;;  %129 = vmatpush1.msra.mxu0 %v75_v33 }
  0x3b   :  { %204 = vmatpush1.msra.mxu1 %v71_v26  ;;  %130 = vmatprep.subr.mxu0 %v73_v34 }
  0x3c   :  { %205 = vmatprep.subr.mxu1 %v559_v0  ;;  %131 = vmatpush1.msra.mxu0 %v72_v36  ;;  %v570_v36 = vmov 2  }
  0x3d   :  { %206 = vmatpush1.msra.mxu1 %v68_v29  ;;  %132 = vmatprep.subr.mxu0 %v70_v37  ;;  %v566_v29 = vmov 40   ;;  %v571_v37 = vmov 3  }
  0x3e   :  { %207 = vmatprep.subr.mxu1 %v559_v0  ;;  %133 = vmatpush1.msra.mxu0 %v69_v39 }
  0x3f   :  { %208 = vmatpush1.msra.mxu1 %v65_v32  ;;  %134 = vmatprep.subr.mxu0 %v67_v40  ;;  %v569_v32 = vmov 0  }
  0x40   :  { %209 = vmatprep.subr.mxu1 %v559_v0  ;;  %135 = vmatpush1.msra.mxu0 %v66_v42 }
  0x41   :  { %210 = vmatpush1.msra.mxu1 %v62_v35  ;;  %136 = vmatprep.subr.mxu0 %v64_v43 }
  0x42   :  { %211 = vmatprep.subr.mxu1 %v559_v0  ;;  %137 = vmatpush1.msra.mxu0 %v63_v45 }
  0x43   :  { %212 = vmatpush1.msra.mxu1 %v59_v38  ;;  %138 = vmatprep.subr.mxu0 %v61_v46  ;;  %v572_v38 = vmov 37  }
  0x44   :  { %213 = vmatprep.subr.mxu1 %v559_v0  ;;  %139 = vmatpush1.msra.mxu0 %v60_v48 }
  0x45   :  { %214 = vmatpush1.msra.mxu1 %v56_v41  ;;  %140 = vmatprep.subr.mxu0 %v58_v50 }
  0x46   :  { %243 = vmatprep.subr.mxu1 %v559_v0  ;;  %141 = vmatpush1.msra.mxu0 %v57_v51 }
  0x47   :  { %244 = vmatpush2.msra.mxu1 %v107_v44  ;;  %419 = vmatprep.mubr.msk.f32.mxu0 %vm108_vm0, %v611_v7 }
  0x48   :  { %245 = vmatprep.subr.mxu1 %v559_v0  ;;  %142 = vmatprep.subr.mxu0 %v55_v52 }
  0x49   :  { %246 = vmatpush2.msra.mxu1 %v104_v47  ;;  %143 = vmatpush1.msra.mxu0 %v54_v53 }
  0x4a   :  { %248 = vmatmul.mubr.f32.vlgmr.msra.gmra.mxu1 %v52_v49  ;;  %172 = vmatprep.subr.mxu0 %v106_v54 }
  0x4b   :  { %173 = vmatpush2.msra.mxu0 %v105_v55 }
  0x4c   :  { %174 = vmatprep.subr.mxu0 %v103_v56 }
  0x4d   :  { %175 = vmatpush2.msra.mxu0 %v102_v57 }
  0x4e   :  { %177 = vmatmul.mubr.f32.vlgmr.msra.gmra.mxu0 %v52_v49 }
 0x10a   :  { %v631_v58 = vpop.f32.mrf.mxu1 }
 0x10b   :  { %314 = vperm.xlu0 %446, %v631_v58  }
 0x10c   :  { %v251_v59 = vpop.f32.mrf.mxu1 }
 0x10e   :  { %v635_v5 = vpop.f32.mrf.mxu0 }
 0x10f   :  { %322 = vrot.lane.b32.xlu0 %v253_v60, %s561_s0 }
 0x110   :  { %v637_v6 = vpop.f32.mrf.mxu0  ;;  %448 = vset.pattern.permute.xlu0 %v564_v19 }
 0x186   :  { %v315_v62 = vpop.permute.xlu0 %314 }
 0x187   :  { %v317_v63 = vadd.f32 %v315_v62, %v631_v58 }
 0x189   :  { %v319_v0 = vmul.f32 0.2, %v317_v63  ;;  %vm318_vm1 = vcmp.ge.f32.partialorder %v317_v63, 0.0 }
 0x18a   :  { %v323_v1 = vpop.permute.xlu0 %322 }
 0x18b   :  { %v320_v2 = vsel %vm318_vm1, %v317_v63, %v319_v0 }
 0x18c   :  { %v325_v3 = vadd.f32 %v323_v1, %v320_v2 }
 0x18e   :  { %v327_v4 = vsel %vm326_vm2, %v325_v3, -inf }
 0x18f   :  { %328 = vmax.xlane.f32.xlu1 %v327_v4 }
 0x1a0   :  { %256 = vperm.xlu1 %447, %v637_v6  }
 0x1a4   :  { %449 = vset.pattern.permute.xlu1 %v565_v20 }
 0x218   :  { %v329_v7 = vpop.xlane.xlu1 %328 }
 0x219   :  { %v330_v8 = vsub.f32 %v325_v3, %v329_v7 }
 0x21b   :  { %v331_v9 = vmul.f32 1.442695, %v330_v8 }
 0x21c   :  { %v257_v11 = vpop.permute.xlu1 %256 }
 0x21d   :  { %458 = vpow2.f32 %v331_v9  ;;  %v259_v12 = vadd.f32 %v257_v11, %v637_v6 }
 0x21f   :  { %v261_v13 = vmul.f32 0.2, %v259_v12  ;;  %vm260_vm3 = vcmp.ge.f32.partialorder %v259_v12, 0.0 }
 0x221   :  { %v262_v14 = vsel %vm260_vm3, %v259_v12, %v261_v13 }
 0x222   :  { %v263_v15 = vadd.f32 %v262_v14, %v253_v60 }
 0x224   :  { %v265_v16 = vsel %vm264_vm4, %v263_v15, -inf }
 0x22a   :  { %v459_v10 = vpop.eup %458 }
 0x22b   :  { %334 = vrot.lane.b32.xlu0 %v459_v10, %s563_s2 }
 0x24a   :  { %266 = vmax.xlane.f32.xlu0 %v265_v16 }
 0x29d   :  { %v335_v17 = vpop.permute.xlu0 %334 }
 0x29e   :  { %v338_v18 = vsel %vm337_vm5, %v335_v17, 0.0 }
 0x29f   :  { %339 = vadd.xlane.f32.xlu1 %v338_v18 }
 0x2d3   :  { %v267_v21 = vpop.xlane.xlu0 %266 }
 0x2d4   :  { %v268_v22 = vsub.f32 %v263_v15, %v267_v21 }
 0x2d6   :  { %v269_v23 = vmul.f32 1.442695, %v268_v22 }
 0x2d8   :  { %460 = vpow2.f32 %v269_v23 }
 0x2e5   :  { %v461_v24 = vpop.eup %460 }
 0x2e6   :  { %v271_v25 = vsel %vm264_vm4, %v461_v24, 0.0 }
 0x2e7   :  { %272 = vadd.xlane.f32.xlu0 %v271_v25 }
 0x328   :  { %v340_v26 = vpop.xlane.xlu1 %339 }
 0x329   :  { %462 = vrcp.f32 %v340_v26 }
 0x336   :  { %v463_v27 = vpop.eup %462 }
 0x337   :  { %v342_v28 = vmul.f32 %v463_v27, %v459_v10 }
 0x339   :  { %360 = vperm.xlu1 %449, %v342_v28   ;;  %350 = vperm.xlu0 %448, %v342_v28  }
 0x33d   :  { %450 = vset.pattern.permute.xlu1 %v566_v29  ;;  %455 = vset.pattern.permute.xlu0 %v567_v30 }
 0x33e   :  { %370 = vperm.xlu1 %450, %v342_v28   ;;  %386 = vperm.xlu0 %455, %v342_v28  }
 0x342   :  { %451 = vset.pattern.permute.xlu1 %v568_v31  ;;  %456 = vset.pattern.permute.xlu0 %v569_v32 }
 0x370   :  { %v273_v33 = vpop.xlane.xlu0 %272 }
 0x371   :  { %464 = vrcp.f32 %v273_v33 }
 0x37e   :  { %v465_v34 = vpop.eup %464 }
 0x37f   :  { %v275_v35 = vmul.f32 %v465_v34, %v461_v24 }
 0x381   :  { %283 = vperm.xlu1 %451, %v275_v35  }
 0x385   :  { %452 = vset.pattern.permute.xlu1 %v570_v36 }
 0x386   :  { %293 = vperm.xlu1 %452, %v275_v35  }
 0x38a   :  { %453 = vset.pattern.permute.xlu1 %v571_v37 }
 0x38b   :  { %303 = vperm.xlu1 %453, %v275_v35  }
 0x38f   :  { %454 = vset.pattern.permute.xlu1 %v572_v38 }
 0x390   :  { %345 = vperm.xlu1 %454, %v342_v28  }
 0x3b4   :  { %v361_v39 = vpop.permute.xlu1 %360  ;;  %v351_v40 = vpop.permute.xlu0 %350 }
 0x3b5   :  { %v353_v41 = vmul.f32 %v351_v40, %v637_v6  ;;  %v363_v42 = vmul.f32 %v361_v39, %v637_v6 }
 0x3b7   :  { %355 = vrot.lane.b32.xlu1 %v353_v41, %s573_s28 }
 0x3b9   :  { %v371_v43 = vpop.permute.xlu1 %370  ;;  %v387_v54 = vpop.permute.xlu0 %386 }
 0x3ba   :  { %v373_v44 = vmul.f32 %v371_v43, %v637_v6  ;;  %v374_v45 = vmul.f32 %v371_v43, %v631_v58  ;;  %v389_v63 = vmul.f32 %v387_v54, %v631_v58 }
 0x3bb   :  { %365 = vrot.lane.b32.xlu1 %v363_v42, %s574_s29 }
 0x3bc   :  { %377 = vrot.lane.b32.xlu0 %v373_v44, %s575_s30 }
 0x3bf   :  { %379 = vrot.lane.b32.xlu1 %v374_v45, %s575_s30 }
 0x3c0   :  { %278 = vperm.xlu0 %456, %v275_v35  }
 0x3c4   :  { %457 = vset.pattern.permute.xlu0 %v567_v30 }
 0x3fc   :  { %v284_v46 = vpop.permute.xlu1 %283 }
 0x3fd   :  { %v286_v47 = vmul.f32 %v284_v46, %v635_v5 }
 0x3ff   :  { %288 = vrot.lane.b32.xlu1 %v286_v47, %s573_s28 }
 0x401   :  { %v294_v48 = vpop.permute.xlu1 %293 }
 0x402   :  { %v296_v49 = vmul.f32 %v294_v48, %v635_v5 }
 0x404   :  { %298 = vrot.lane.b32.xlu1 %v296_v49, %s574_s29 }
 0x406   :  { %v304_v50 = vpop.permute.xlu1 %303 }
 0x407   :  { %v306_v51 = vmul.f32 %v304_v50, %v635_v5 }
 0x409   :  { %308 = vrot.lane.b32.xlu0 %v306_v51, %s575_s30 }
 0x40b   :  { %v346_v52 = vpop.permute.xlu1 %345 }
 0x40c   :  { %v348_v55 = vmul.f32 %v346_v52, %v637_v6 }
 0x429   :  { %v356_v53 = vpop.permute.xlu1 %355 }
 0x42a   :  { %v358_v57 = vadd.f32 %v356_v53, %v348_v55 }
 0x42d   :  { %v366_v56 = vpop.permute.xlu1 %365 }
 0x42e   :  { %v368_v59 = vadd.f32 %v366_v56, %v358_v57  ;;  %v378_v60 = vpop.permute.xlu0 %377 }
 0x431   :  { %v380_v61 = vpop.permute.xlu1 %379 }
 0x432   :  { %v382_v62 = vsel %vm381_vm6, %v378_v60, %v380_v61 }
 0x433   :  { %v384_v0 = vadd.f32 %v382_v62, %v368_v59 }
 0x435   :  { %v390_v1 = vadd.f32 %v389_v63, %v384_v0 }
 0x437   :  { %393 = vrot.lane.b32.xlu1 %v390_v1, %s576_s4 }
 0x43b   :  { %v279_v3 = vpop.permute.xlu0 %278 }
 0x43c   :  { %v281_v4 = vmul.f32 %v279_v3, %v635_v5 }
 0x471   :  { %v289_v2 = vpop.permute.xlu1 %288 }
 0x472   :  { %v291_v6 = vadd.f32 %v289_v2, %v281_v4 }
 0x476   :  { %v299_v7 = vpop.permute.xlu1 %298 }
 0x477   :  { %v301_v9 = vadd.f32 %v299_v7, %v291_v6 }
 0x47b   :  { %v309_v8 = vpop.permute.xlu0 %308 }
 0x47c   :  { %v311_v10 = vadd.f32 %v309_v8, %v301_v9 }
 0x47e   :  { %v391_v11 = vadd.f32 %v311_v10, %v635_v5 }
 0x4a9   :  { %v394_v12 = vpop.permute.xlu1 %393 }
 0x4aa   :  { %v396_v13 = vadd.f32 %v394_v12, %v391_v11 }
 0x4ac   :  { %v398_v14 = vmul.f32 1.442695, %v396_v13  ;;  %vm397_vm7 = vcmp.gt.f32.partialorder %v396_v13, 0.0 }
 0x4ae   :  { %466 = vpow2.f32 %v398_v14 }
 0x4bb   :  { %v467_v58 = vpop.eup %466 }
 0x4bc   :  { %v421_v15 = vadd.f32 -1.0, %v467_v58 }
 0x4be   :  { %v401_v16 = vsel %vm397_vm7, %v396_v13, %v421_v15 }
 0x4bf   :  { %402 = vst.msk [vmem:[#allocation8] sm:$0xff] %vm381_vm6, %v401_v16 }
 0x4c0   :  { %539 = shalt.err (!%p536_p5)
}
 0x4c1   :  { %412 = dma.vmem_to_hbm [thread:$0]  %s410_s6, 128, %s662_s3, [#allocation4]  }
 0x4c2   :  { %552 = dma.done.wait [#allocation4], 128  }
 0x4c3   :  { %553 = vsyncadd [#allocation4], 4294967168 }
 0x4c4   :  { %416 = vsyncpa [#allocation3], 1 }
 0x4c5   :  { %417 = vsyncpa [#allocation6], 1 }
 0x4c6   :  { %418 = vsyncpa [#allocation4], 1 }

</bundles_post_ra>
